<compile_context>
chip_gen: v7x
topology: tpu7x:2x2x1
jax: 0.10.0
libtpu: 0.0.40
codegen_flags: <defaults>
</compile_context>

<pallas_src>
import functools

import jax
import jax.numpy as jnp
from jax.experimental import pallas as pl
from jax.experimental.pallas import tpu as pltpu

LANE = 128
# Safe under v7x's 64 MiB/TC, generous headroom on v5e/v6e's 128 MiB.
_VMEM_BUDGET = 44 * 1024 * 1024


def _round_up(x: int, m: int) -> int:
    return (x + m - 1) // m * m


def _dense_bias_kernel(x_ref, w_ref, b_ref, o_ref, *, compute_dtype):
    # x tile is loaded in its HBM dtype and cast on the VPU here (free filler
    # under MXU slack); this halves the wrapper-side HBM traffic on x compared
    # with casting before the pallas_call.
    x = x_ref[...].astype(compute_dtype)
    acc = jnp.dot(x, w_ref[...], preferred_element_type=jnp.float32)
    o_ref[...] = (acc + b_ref[...]).astype(o_ref.dtype)


def _resident_spec(block_shape, index_map):
    """Grid-invariant block: request single buffering (no double-buffer copy)."""
    buffered = getattr(pl, "Buffered", None)
    if buffered is not None:
        try:
            return pl.BlockSpec(block_shape, index_map, pipeline_mode=buffered(1))
        except TypeError:
            pass  # older API without pipeline_mode: fall back to default buffering
    return pl.BlockSpec(block_shape, index_map)


def donut_swin_output_forward(hidden_states, weight, bias, *,
                              tm: int = 256,
                              compute_dtype=jnp.bfloat16,
                              out_dtype=None):
    """DonutSwinOutput forward (inference-mode dropout = identity).

    hidden_states: [B, S, K]   (K = mlp_ratio * dim)
    weight:        [N, K]      PyTorch nn.Linear layout [out_features, in_features]
    bias:          [N]
    returns:       [B, S, N]
    """
    B, S, K = hidden_states.shape
    N, Kw = weight.shape
    assert Kw == K, "weight must be [out_features, in_features] with in_features == K"
    M = B * S
    x_dtype = hidden_states.dtype
    out_dtype = x_dtype if out_dtype is None else out_dtype

    # Kernel wants W as [K, N]. W is the small operand; in a real deployment it
    # would be pre-transposed / pre-cast once at weight-load time.
    w_kn = jnp.asarray(weight).T.astype(compute_dtype)
    b_row = jnp.asarray(bias).reshape(1, N).astype(jnp.float32)

    K_pad = _round_up(K, LANE)
    N_pad = _round_up(N, LANE)

    def _is16(dt):
        return jnp.dtype(dt).itemsize == 2

    # Sublane alignment: 16 rows when any 16-bit dtype is in play, else 8.
    align = 16 if (_is16(compute_dtype) or _is16(out_dtype) or _is16(x_dtype)) else 8

    # Clamp tm for tiny inputs (don't over-pad), keep sublane alignment.
    tm_eff = max(align, min(tm, _round_up(M, align)))
    # Keep >=2 grid steps for moderate/large M so ("parallel",) can shard the
    # M axis across v7x's two TensorCores.
    if M >= 2 * LANE and _round_up(M, tm_eff) // tm_eff < 2:
        tm_eff = _round_up((M + 1) // 2, align)

    def _vmem_bytes(t):
        return (K_pad * N_pad * jnp.dtype(compute_dtype).itemsize   # resident W (x1, Buffered(1))
                + N_pad * 4                                          # resident bias
                + 2 * t * K_pad * jnp.dtype(x_dtype).itemsize        # x tile double-buffer
                + 2 * t * N_pad * jnp.dtype(out_dtype).itemsize)     # out tile double-buffer

    # Shrink tm if the estimate would crowd v7x's 64 MiB VMEM.
    while tm_eff > align and _vmem_bytes(tm_eff) > _VMEM_BUDGET:
        tm_eff = max(align, _round_up(tm_eff // 2, align))

    M_pad = _round_up(M, tm_eff)

    x2d = hidden_states.reshape(M, K)
    # Pad only when the true shape is not already tile-aligned (never for the
    # real Donut-Swin stages: dim in {128, 256, 512, 1024}) -> no extra HBM
    # read+write passes over the dominant x operand.
    if (M_pad, K_pad) != (M, K):
        x2d = jnp.pad(x2d, ((0, M_pad - M), (0, K_pad - K)))
    if (K_pad, N_pad) != (K, N):
        w_kn = jnp.pad(w_kn, ((0, K_pad - K), (0, N_pad - N)))
    if N_pad != N:
        b_row = jnp.pad(b_row, ((0, 0), (0, N_pad - N)))

    grid = (M_pad // tm_eff,)

    flops = 2 * M_pad * K_pad * N_pad
    bytes_accessed = (M_pad * K_pad * jnp.dtype(x_dtype).itemsize      # x (streamed)
                      + K_pad * N_pad * jnp.dtype(compute_dtype).itemsize  # W (resident)
                      + N_pad * 4                                      # bias
                      + M_pad * N_pad * jnp.dtype(out_dtype).itemsize)  # y writeback

    out = pl.pallas_call(
        functools.partial(_dense_bias_kernel, compute_dtype=compute_dtype),
        out_shape=jax.ShapeDtypeStruct((M_pad, N_pad), out_dtype),
        grid_spec=pltpu.PrefetchScalarGridSpec(
            num_scalar_prefetch=0,
            grid=grid,
            in_specs=[
                pl.BlockSpec((tm_eff, K_pad), lambda i: (i, 0)),    # x tile (streams)
                _resident_spec((K_pad, N_pad), lambda i: (0, 0)),   # full W (resident, x1 buffer)
                _resident_spec((1, N_pad), lambda i: (0, 0)),       # bias row (resident)
            ],
            out_specs=pl.BlockSpec((tm_eff, N_pad), lambda i: (i, 0)),
        ),
        compiler_params=pltpu.CompilerParams(
            dimension_semantics=("parallel",),
            vmem_limit_bytes=_VMEM_BUDGET + (8 << 20),
        ),
        cost_estimate=pl.CostEstimate(
            flops=flops, transcendentals=0, bytes_accessed=bytes_accessed),
    )(x2d, w_kn, b_row)

    if (M_pad, N_pad) != (M, N):
        out = out[:M, :N]

    # Dropout is identity at inference.
    # TODO(synk): training-mode dropout would use pltpu.prng_seed +
    # pltpu.stateful_bernoulli in-kernel; not implemented here.
    return out.reshape(B, S, N)


def _reference(hidden_states, weight, bias):
    """Pure-JAX reference of nn.Linear (PyTorch weight layout) at full precision."""
    B, S, K = hidden_states.shape
    y = jnp.dot(hidden_states.reshape(-1, K), weight.T,
                precision=jax.lax.Precision.HIGHEST) + bias
    return y.reshape(B, S, -1)


if __name__ == "__main__":
    key = jax.random.PRNGKey(0)

    # ---- Config A: tiny, N not lane-aligned (exercises the padded path) ----
    batch, seq, dim, mlp_ratio = 2, 8, 32, 4
    in_features = mlp_ratio * dim  # 128
    k_x, k_w, k_b, key = jax.random.split(key, 4)
    x_a = jax.random.normal(k_x, (batch, seq, in_features), dtype=jnp.float32)
    bound = 1.0 / (in_features ** 0.5)
    w_a = jax.random.uniform(k_w, (dim, in_features), jnp.float32, -bound, bound)  # [out, in]
    b_a = jax.random.uniform(k_b, (dim,), jnp.float32, -bound, bound)
    ref_a = _reference(x_a, w_a, b_a)

    out_f32 = jax.block_until_ready(
        donut_swin_output_forward(x_a, w_a, b_a, compute_dtype=jnp.float32))
    assert out_f32.shape == (batch, seq, dim)
    assert jnp.allclose(out_f32, ref_a, atol=2e-3, rtol=2e-3), "A: f32 mismatch"

    out_bf16 = jax.block_until_ready(
        donut_swin_output_forward(x_a, w_a, b_a, compute_dtype=jnp.bfloat16))
    assert jnp.allclose(out_bf16, ref_a, atol=6e-2, rtol=6e-2), "A: bf16 mismatch"

    # ---- Config B: lane-aligned real-stage-like shape (no-pad fast path) ----
    batch, seq, dim, mlp_ratio = 1, 128, 128, 4
    in_features = mlp_ratio * dim  # 512
    k_x, k_w, k_b, key = jax.random.split(key, 4)
    x_b = jax.random.normal(k_x, (batch, seq, in_features), dtype=jnp.float32)
    bound = 1.0 / (in_features ** 0.5)
    w_b = jax.random.uniform(k_w, (dim, in_features), jnp.float32, -bound, bound)
    b_b = jax.random.uniform(k_b, (dim,), jnp.float32, -bound, bound)
    ref_b = _reference(x_b, w_b, b_b)

    out_b_f32 = jax.block_until_ready(
        donut_swin_output_forward(x_b, w_b, b_b, compute_dtype=jnp.float32))
    assert out_b_f32.shape == (batch, seq, dim)
    assert jnp.allclose(out_b_f32, ref_b, atol=2e-3, rtol=2e-3), "B: f32 mismatch"

    out_b_bf16 = jax.block_until_ready(
        donut_swin_output_forward(x_b, w_b, b_b, compute_dtype=jnp.bfloat16))
    assert jnp.allclose(out_b_bf16, ref_b, atol=8e-2, rtol=8e-2), "B: bf16 mismatch"

    print("KERNEL_OK")
</pallas_src>

<mosaic_0001>
module attributes {stable_mosaic.version = 11 : i64} {
  func.func @_dense_bias_kernel(%arg0: i32, %arg1: memref<16x128xf32, #tpu.memory_space<vmem>>, %arg2: memref<128x128xf32, #tpu.memory_space<vmem>>, %arg3: memref<1x128xf32, #tpu.memory_space<vmem>>, %arg4: memref<16x128xf32, #tpu.memory_space<vmem>>) attributes {dimension_semantics = [#tpu.dimension_semantics<parallel>], iteration_bounds = array<i64: 1>, scalar_prefetch = 0 : i64, scratch_operands = 0 : i64, tpu.core_type = #tpu.core_type<tc>, window_params = [{transform_indices = @transform_0, window_bounds = array<i64: 16, 128>}, {pipeline_mode = #tpu.pipeline_mode<synchronous>, transform_indices = @transform_1, window_bounds = array<i64: 128, 128>}, {pipeline_mode = #tpu.pipeline_mode<synchronous>, transform_indices = @transform_2, window_bounds = array<i64: 1, 128>}, {transform_indices = @transform_3, window_bounds = array<i64: 16, 128>}]} {
    %c0 = arith.constant 0 : index
    %c0_0 = arith.constant 0 : index
    %0 = vector.load %arg1[%c0, %c0_0] : memref<16x128xf32, #tpu.memory_space<vmem>>, vector<16x128xf32>
    %c0_1 = arith.constant 0 : index
    %c0_2 = arith.constant 0 : index
    %1 = vector.load %arg2[%c0_1, %c0_2] : memref<128x128xf32, #tpu.memory_space<vmem>>, vector<128x128xf32>
    %cst = arith.constant dense<0.000000e+00> : vector<16x128xf32>
    %2 = tpu.matmul %0, %1, %cst {dimension_numbers = #tpu.dot_dimension_numbers<[1], [0], [0], [1], [0, 0, 1, 1], [], []>} : vector<16x128xf32>, vector<128x128xf32>, vector<16x128xf32> -> vector<16x128xf32>
    %c0_3 = arith.constant 0 : index
    %c0_4 = arith.constant 0 : index
    %3 = vector.load %arg3[%c0_3, %c0_4] : memref<1x128xf32, #tpu.memory_space<vmem>>, vector<1x128xf32>
    %4 = vector.broadcast %3 : vector<1x128xf32> to vector<16x128xf32>
    %5 = arith.addf %2, %4 : vector<16x128xf32>
    %c0_5 = arith.constant 0 : index
    %c0_6 = arith.constant 0 : index
    %6 = vector.load %arg4[%c0_5, %c0_6] : memref<16x128xf32, #tpu.memory_space<vmem>>, vector<16x128xf32>
    tpu.vector_store %arg4[%c0_5, %c0_6], %5 {strides = array<i32>} : memref<16x128xf32, #tpu.memory_space<vmem>>, vector<16x128xf32>,
    return
  }
  func.func @transform_0(%arg0: i32) -> (i32, i32) {
    %c0_i32 = arith.constant 0 : i32
    %c0_i32_0 = arith.constant 0 : i32
    return %arg0, %c0_i32 : i32, i32
  }
  func.func @transform_1(%arg0: i32) -> (i32, i32) {
    %c0_i32 = arith.constant 0 : i32
    %c0_i32_0 = arith.constant 0 : i32
    %c0_i32_1 = arith.constant 0 : i32
    return %c0_i32, %c0_i32_0 : i32, i32
  }
  func.func @transform_2(%arg0: i32) -> (i32, i32) {
    %c0_i32 = arith.constant 0 : i32
    %c0_i32_0 = arith.constant 0 : i32
    %c0_i32_1 = arith.constant 0 : i32
    return %c0_i32, %c0_i32_0 : i32, i32
  }
  func.func @transform_3(%arg0: i32) -> (i32, i32) {
    %c0_i32 = arith.constant 0 : i32
    %c0_i32_0 = arith.constant 0 : i32
    return %arg0, %c0_i32 : i32, i32
  }
}

</mosaic_0001>

<bundles_post_ra>
// kernel: tpu_custom_call.1
= control target key start
LH: loop header
LB: loop body
LE: loop exit
PB: predicated region body
PF: predicated region fallthrough
CT: control target
= control target key end

     0   :  { %8 = vsyncpa [#allocation3], 0  ;;  %s399_s0 = inlined_call_operand.hbm [shape: f32[16,128], index: 0, kind: input, shape index: {}]   ;;  %s400_s1 = inlined_call_operand.hbm [shape: f32[128,128], index: 1, kind: input, shape index: {}]   ;;  %s401_s2 = inlined_call_operand.vmem [shape: f32[1,128], index: 2, kind: input, shape index: {}]   ;;  %s402_s3 = inlined_call_operand.hbm [shape: f32[16,128], index: 3, kind: output, shape index: {}]  }
   0x1   :  { %9 = vsyncpa [#allocation6], 0 }
   0x2   :  { %10 = vsyncpa [#allocation4], 0  ;;  %s326_s12 = smov [#allocation2]   ;;  %s254_s16 = scalar_lea.hbm %s399_s0, 256 }
   0x3   :  { %s16_s13 = sshll.u32 %s326_s12, 4  ;;  %p255_p0 = scmp.ne.s32.totalorder %s399_s0, %s254_s16  ;;  %s17_s13 = int_to_ptr.vmem [resolvable:$true] %s16_s13 }
   0x4   :  { %p258_p1 = scmp.lt.u32.totalorder %s254_s16, %s399_s0 }
   0x6   :  { %p260_p2 = pnand %p258_p1, %p255_p0 }
   0x8   :  { %263 = shalt.err (!%p260_p2)
}
   0x9   :  { %s264_s21 = scalar_lea.vmem %s17_s13, 256  ;;  %p269_p4 = scmp.lt.s32.totalorder %s17_s13, %s17_s13 }
   0xa   :  { %p265_p3 = scmp.ne.s32.totalorder %s17_s13, %s264_s21  ;;  %p270_p5 = scmp.lt.s32.totalorder %s264_s21, %s264_s21 }
   0xc   :  { %p271_p6 = por %p270_p5, %p269_p4 }
   0xe   :  { %p272_p7 = pnand %p271_p6, %p265_p3 }
  0x10   :  { %275 = shalt.err (!%p272_p7)
}
  0x11   :  { %s327_s22 = smov 128   ;;  %s328_s23 = smov 8  }
  0x12   :  { %22 = dma.hbm_to_vmem [thread:$0]  %s399_s0, 256, %s17_s13, [#allocation3], %s327_s22, %s327_s22, %s328_s23  }
  0x13   :  { %s329_s26 = smov [#allocation5]   ;;  %s276_s30 = scalar_lea.hbm %s400_s1, 2048 }
  0x14   :  { %s28_s27 = sshll.u32 %s329_s26, 4  ;;  %p277_p8 = scmp.ne.s32.totalorder %s400_s1, %s276_s30  ;;  %s29_s27 = int_to_ptr.vmem [resolvable:$true] %s28_s27 }
  0x15   :  { %p280_p9 = scmp.lt.u32.totalorder %s276_s30, %s400_s1 }
  0x17   :  { %p282_p10 = pnand %p280_p9, %p277_p8 }
  0x19   :  { %285 = shalt.err (!%p282_p10)
}
  0x1a   :  { %s286_s8 = scalar_lea.vmem %s29_s27, 2048  ;;  %p291_p12 = scmp.lt.s32.totalorder %s29_s27, %s29_s27 }
  0x1b   :  { %p287_p11 = scmp.ne.s32.totalorder %s29_s27, %s286_s8  ;;  %p292_p13 = scmp.lt.s32.totalorder %s286_s8, %s286_s8 }
  0x1d   :  { %p293_p0 = por %p292_p13, %p291_p12 }
  0x1f   :  { %p294_p1 = pnand %p293_p0, %p287_p11 }
  0x21   :  { %297 = shalt.err (!%p294_p1)
}
  0x22   :  { %34 = dma.hbm_to_vmem [thread:$0]  %s400_s1, 2048, %s29_s27, [#allocation6], %s327_s22, %s327_s22, %s328_s23  }
  0x23   :  { %320 = dma.done.wait [#allocation3], 256  }
  0x24   :  { %321 = vsyncadd [#allocation3], 4294967040 }
  0x25   :  { %322 = dma.done.wait [#allocation6], 2048  }
  0x26   :  { %323 = vsyncadd [#allocation6], 4294965248  ;;  %v45_v0 = vld [vmem:[#allocation5] sm:$0xff]  ;;  %v46_v1 = vld [vmem:[#allocation5 + $0x8] sm:$0xff]  ;;  %s330_s11 = smov [#allocation7]  }
  0x27   :  { %v47_v2 = vld [vmem:[#allocation5 + $0x10] sm:$0xff]  ;;  %v217_v3 = vpack.c.bf16 %v46_v1, %v45_v0  ;;  %v48_v4 = vld [vmem:[#allocation5 + $0x18] sm:$0xff]  ;;  %v49_v6 = vld [vmem:[#allocation5 + $0x20] sm:$0xff]  ;;  %s150_s12 = sshll.u32 %s330_s11, 4  ;;  %s151_s12 = int_to_ptr.vmem [resolvable:$true] %s150_s12 }
  0x28   :  { %v221_v5 = vpack.c.bf16 %v48_v4, %v47_v2  ;;  %v50_v7 = vld [vmem:[#allocation5 + $0x28] sm:$0xff]  ;;  %v43_v9 = vld [vmem:[#allocation2] sm:$0xff]  ;;  %v52_v11 = vld [vmem:[#allocation5 + $0x38] sm:$0xff]  ;;  %s298_s13 = scalar_lea.vmem %s151_s12, 256  ;;  %p303_p3 = scmp.lt.s32.totalorder %s151_s12, %s151_s12 }
  0x29   :  { %218 = vmatprep.subr.bf16.mxu0 %v217_v3  ;;  %v225_v8 = vpack.c.bf16 %v50_v7, %v49_v6  ;;  %v51_v10 = vld [vmem:[#allocation5 + $0x30] sm:$0xff]  ;;  %214 = vmatprep.mubr.f32.mxu0 %v43_v9  ;;  %v53_v13 = vld [vmem:[#allocation5 + $0x40] sm:$0xff]  ;;  %v54_v14 = vld [vmem:[#allocation5 + $0x48] sm:$0xff]  ;;  %p299_p2 = scmp.ne.s32.totalorder %s151_s12, %s298_s13  ;;  %p304_p4 = scmp.lt.s32.totalorder %s298_s13, %s298_s13 }
  0x2a   :  { %220 = vmatpush3.bf16.msra.mxu0 %v217_v3  ;;  %v229_v12 = vpack.c.bf16 %v52_v11, %v51_v10  ;;  %v233_v15 = vpack.c.bf16 %v54_v14, %v53_v13  ;;  %v55_v16 = vld [vmem:[#allocation5 + $0x50] sm:$0xff]  ;;  %v56_v17 = vld [vmem:[#allocation5 + $0x58] sm:$0xff]  ;;  %v57_v19 = vld [vmem:[#allocation5 + $0x60] sm:$0xff] }
  0x2b   :  { %222 = vmatprep.subr.bf16.mxu0 %v221_v5  ;;  %v237_v18 = vpack.c.bf16 %v56_v17, %v55_v16  ;;  %v58_v20 = vld [vmem:[#allocation5 + $0x68] sm:$0xff]  ;;  %v59_v22 = vld [vmem:[#allocation5 + $0x70] sm:$0xff]  ;;  %v60_v23 = vld [vmem:[#allocation5 + $0x78] sm:$0xff]  ;;  %p305_p5 = por %p304_p4, %p303_p3 }
  0x2c   :  { %v241_v21 = vpack.c.bf16 %v58_v20, %v57_v19  ;;  %v245_v24 = vpack.c.bf16 %v60_v23, %v59_v22  ;;  %v44_v25 = vld [vmem:[#allocation2 + $0x8] sm:$0xff]  ;;  %v163_v26 = vld [vmem:[%s401_s2] ss:$0 sm:$0xff] }
  0x2d   :  { %p306_p6 = pnand %p305_p5, %p299_p2 }
  0x2e   :  { %224 = vmatpush3.bf16.msra.mxu0 %v221_v5 }
  0x2f   :  { %226 = vmatprep.subr.bf16.mxu0 %v225_v8 }
  0x32   :  { %228 = vmatpush3.bf16.msra.mxu0 %v225_v8 }
  0x33   :  { %230 = vmatprep.subr.bf16.mxu0 %v229_v12 }
  0x36   :  { %232 = vmatpush3.bf16.msra.mxu0 %v229_v12 }
  0x37   :  { %234 = vmatprep.subr.bf16.mxu0 %v233_v15 }
  0x3a   :  { %236 = vmatpush3.bf16.msra.mxu0 %v233_v15 }
  0x3b   :  { %238 = vmatprep.subr.bf16.mxu0 %v237_v18 }
  0x3e   :  { %240 = vmatpush3.bf16.msra.mxu0 %v237_v18 }
  0x3f   :  { %242 = vmatprep.subr.bf16.mxu0 %v241_v21 }
  0x42   :  { %244 = vmatpush3.bf16.msra.mxu0 %v241_v21 }
  0x43   :  { %246 = vmatprep.subr.bf16.mxu0 %v245_v24 }
  0x46   :  { %248 = vmatpush3.bf16.msra.mxu0 %v245_v24 }
  0x49   :  { %215 = vmatmul.mubr.f32.vlgmr.msra.gmra.mrb[0].mxu0 %v44_v25 }
 0x11c   :  { %v216_v27 = vpop.f32.mrb[0].mxu0 }
 0x11d   :  { %v140_v28 = vadd.f32 %v216_v27, %v163_v26  ;;  %v134_v29 = vpop.f32.mrb[1].mxu0 }
 0x11e   :  { %v135_v30 = vadd.f32 %v163_v26, %v134_v29 }
 0x11f   :  { %144 = vst [vmem:[#allocation7 + $0x8] sm:$0xff] %v140_v28 }
 0x120   :  { %143 = vst [vmem:[#allocation7] sm:$0xff] %v135_v30 }
 0x121   :  { %309 = shalt.err (!%p306_p6)
}
 0x122   :  { %s310_s2 = scalar_lea.hbm %s402_s3, 256 }
 0x123   :  { %p311_p7 = scmp.ne.s32.totalorder %s402_s3, %s310_s2  ;;  %p314_p8 = scmp.lt.u32.totalorder %s310_s2, %s402_s3 }
 0x125   :  { %p316_p9 = pnand %p314_p8, %p311_p7 }
 0x127   :  { %319 = shalt.err (!%p316_p9)
}
 0x128   :  { %156 = dma.vmem_to_hbm [thread:$0]  %s151_s12, 256, %s402_s3, [#allocation4], %s327_s22, %s327_s22, %s328_s23  }
 0x129   :  { %324 = dma.done.wait [#allocation4], 256  }
 0x12a   :  { %325 = vsyncadd [#allocation4], 4294967040 }
 0x12b   :  { %160 = vsyncpa [#allocation3], 1 }
 0x12c   :  { %161 = vsyncpa [#allocation6], 1 }
 0x12d   :  { %162 = vsyncpa [#allocation4], 1 }

</bundles_post_ra>
